<compile_context>
chip_gen: v7x
topology: tpu7x:2x2x1
jax: 0.10.0
libtpu: 0.0.40
codegen_flags: <defaults>
</compile_context>

<pallas_src>
import jax
import jax.numpy as jnp
import numpy as np
from jax.experimental import pallas as pl
from jax.experimental.pallas import tpu as pltpu

_LANE = 128
# Below this element count a Pallas custom-call's launch overhead loses to
# XLA's native slice.
_SMALL_ELEMS = 16 * 1024
# Per-DMA minimum output bytes (amortizes descriptor/issue cost) and maximum
# number of concurrent DMAs kept in flight.
_MIN_CHUNK_BYTES = 256 * 1024
_MAX_CHUNKS = 8


def _make_truncate_dma_kernel(b: int, out_len: int, n_chunks: int,
                              chunk_rows: int):
    """Build a kernel that copies x_hbm[:, :out_len] -> o_hbm via chunked DMA."""

    def kernel(x_hbm, o_hbm, sem):
        # Start all chunked strided HBM->HBM copies first (they run
        # concurrently on the DMA engines), then wait on all of them.
        copies = []
        r0 = 0
        for c in range(n_chunks):
            rows = min(chunk_rows, b - r0)
            cp = pltpu.make_async_copy(
                x_hbm.at[pl.ds(r0, rows), pl.ds(0, out_len)],  # column-sliced src
                o_hbm.at[pl.ds(r0, rows)],                     # dense dst rows
                sem.at[c],
            )
            cp.start()
            copies.append(cp)
            r0 += rows
        for cp in copies:
            cp.wait()

    return kernel


def truncate_tokens(tokens: jax.Array, max_seq_len: int) -> jax.Array:
    """Truncate a [batch, seq] (or [seq]) token array to max_seq_len tokens."""
    squeeze = False
    if tokens.ndim == 1:
        tokens = tokens[None, :]
        squeeze = True
    assert tokens.ndim == 2, "expected [batch, seq] token-id array"

    b, s = tokens.shape
    out_len = min(s, max_seq_len)

    # Fast paths: no truncation needed, degenerate/tiny arrays, or a
    # lane-misaligned keep-length.  The XLA slice is already a
    # bandwidth-optimal copy for these and avoids custom-call launch overhead.
    if (
        out_len == s
        or out_len <= 0
        or b * out_len < _SMALL_ELEMS
        or out_len % _LANE != 0
    ):
        out = tokens[:, :out_len]
        return out[0] if squeeze else out

    itemsize = np.dtype(tokens.dtype).itemsize
    out_bytes = b * out_len * itemsize
    # Split rows into up to _MAX_CHUNKS DMAs, each at least _MIN_CHUNK_BYTES of
    # output, so several strided copies are in flight at once.
    n_chunks = int(max(1, min(_MAX_CHUNKS, out_bytes // _MIN_CHUNK_BYTES, b)))
    chunk_rows = -(-b // n_chunks)          # cdiv
    n_chunks = -(-b // chunk_rows)          # actual number of non-empty chunks

    out = pl.pallas_call(
        _make_truncate_dma_kernel(b, out_len, n_chunks, chunk_rows),
        out_shape=jax.ShapeDtypeStruct((b, out_len), tokens.dtype),
        # Keep both operands in HBM; the kernel moves data purely via DMA, so
        # no VMEM is consumed and no tiling constraints apply.
        in_specs=[pl.BlockSpec(memory_space=pl.ANY)],
        out_specs=pl.BlockSpec(memory_space=pl.ANY),
        scratch_shapes=[pltpu.SemaphoreType.DMA((n_chunks,))],
    )(tokens)

    return out[0] if squeeze else out


class Truncate:
    """JAX/Pallas analogue of the PyTorch Truncate module."""

    def __init__(self, max_seq_len: int) -> None:
        self.max_seq_len = max_seq_len

    def __call__(self, inputs: jax.Array) -> jax.Array:
        return truncate_tokens(inputs, self.max_seq_len)


if __name__ == "__main__":
    key = jax.random.PRNGKey(0)

    # --- 1) Tiny batch (matches the module's doc example): XLA fast path. ---
    batch, seq = 2, 8
    max_seq_len = 5
    tokens = jax.random.randint(key, (batch, seq), 0, 1000, dtype=jnp.int32)
    mod = Truncate(max_seq_len)
    out = jax.block_until_ready(mod(tokens))
    assert out.shape == (batch, max_seq_len), out.shape
    assert bool(jnp.all(out == tokens[:, :max_seq_len]))

    # --- 2) Single 1-D sequence / no-op truncation: fast paths. -------------
    single = jax.random.randint(
        jax.random.PRNGKey(1), (seq,), 0, 1000, dtype=jnp.int32
    )
    out1 = jax.block_until_ready(mod(single))
    assert bool(jnp.all(out1 == single[:max_seq_len]))
    out_noop = jax.block_until_ready(Truncate(300)(tokens))
    assert out_noop.shape == (batch, seq)
    assert bool(jnp.all(out_noop == tokens))

    # --- 3) Moderate batch: exercises the single-DMA Pallas path. -----------
    b2, s2, m2 = 512, 256, 128
    tok2 = jax.random.randint(
        jax.random.PRNGKey(2), (b2, s2), 0, 32000, dtype=jnp.int32
    )
    mod2 = Truncate(m2)
    out2 = jax.block_until_ready(mod2(tok2))
    assert out2.shape == (b2, m2), out2.shape
    assert bool(jnp.all(out2 == tok2[:, :m2])), "pallas single-DMA mismatch"

    # --- 4) Larger batch: multiple DMA chunks in flight. --------------------
    b3 = 2048  # out bytes = 1 MiB -> 4 chunks of 512 rows
    tok3 = jax.random.randint(
        jax.random.PRNGKey(3), (b3, s2), 0, 32000, dtype=jnp.int32
    )
    out3 = jax.block_until_ready(mod2(tok3))
    assert out3.shape == (b3, m2), out3.shape
    assert bool(jnp.all(out3 == tok3[:, :m2])), "pallas chunked-DMA mismatch"

    # --- 5) Batch not divisible by the chunk size: remainder chunk. ---------
    b4 = 1111  # 2 chunks: 556 + 555 rows
    tok4 = jax.random.randint(
        jax.random.PRNGKey(4), (b4, s2), 0, 32000, dtype=jnp.int32
    )
    out4 = jax.block_until_ready(mod2(tok4))
    assert out4.shape == (b4, m2), out4.shape
    assert bool(jnp.all(out4 == tok4[:, :m2])), "remainder-chunk mismatch"

    # --- 6) Sub-32-bit dtype (bf16): DMA path has no sublane constraints. ---
    b5, s5, m5 = 512, 384, 256
    tok5 = jax.random.normal(jax.random.PRNGKey(5), (b5, s5)).astype(jnp.bfloat16)
    out5 = jax.block_until_ready(Truncate(m5)(tok5))
    assert out5.shape == (b5, m5), out5.shape
    assert bool(jnp.all(out5 == tok5[:, :m5])), "bf16 dtype mismatch"

    print("KERNEL_OK")
</pallas_src>

<mosaic_0001>
module attributes {stable_mosaic.version = 11 : i64} {
  func.func @kernel(%arg0: memref<512x256xi32, #tpu.memory_space<any>>, %arg1: memref<512x128xi32, #tpu.memory_space<any>>, %arg2: memref<1x!tpu.dma_semaphore, #tpu.memory_space<semaphore_mem>>) attributes {dimension_semantics = [], scalar_prefetch = 0 : i64, scratch_operands = 1 : i64, tpu.core_type = #tpu.core_type<tc>} {
    %c0_i32 = arith.constant 0 : i32
    %c0_i32_0 = arith.constant 0 : i32
    %c0_i32_1 = arith.constant 0 : i32
    %0 = tpu.memref_slice %arg0[%c0_i32_0, %c0_i32_1] : memref<512x256xi32, #tpu.memory_space<any>> -> memref<512x128xi32, #tpu.memory_space<any>>
    %c0_i32_2 = arith.constant 0 : i32
    %c0_i32_3 = arith.constant 0 : i32
    %1 = tpu.memref_slice %arg1[%c0_i32_2, %c0_i32_3] : memref<512x128xi32, #tpu.memory_space<any>> -> memref<512x128xi32, #tpu.memory_space<any>>
    %2 = tpu.memref_slice %arg2[%c0_i32] : memref<1x!tpu.dma_semaphore, #tpu.memory_space<semaphore_mem>> -> memref<1x!tpu.dma_semaphore, #tpu.memory_space<semaphore_mem>>
    %3 = tpu.memref_squeeze %2 : memref<1x!tpu.dma_semaphore, #tpu.memory_space<semaphore_mem>> -> memref<!tpu.dma_semaphore, #tpu.memory_space<semaphore_mem>>
    tpu.enqueue_dma source(%0 : memref<512x128xi32, #tpu.memory_space<any>>) target(%1 : memref<512x128xi32, #tpu.memory_space<any>>) target_semaphore(%3 : memref<!tpu.dma_semaphore, #tpu.memory_space<semaphore_mem>>)
    %c0_i32_4 = arith.constant 0 : i32
    %c0_i32_5 = arith.constant 0 : i32
    %c0_i32_6 = arith.constant 0 : i32
    %4 = tpu.memref_slice %arg0[%c0_i32_5, %c0_i32_6] : memref<512x256xi32, #tpu.memory_space<any>> -> memref<512x128xi32, #tpu.memory_space<any>>
    %c0_i32_7 = arith.constant 0 : i32
    %c0_i32_8 = arith.constant 0 : i32
    %5 = tpu.memref_slice %arg1[%c0_i32_7, %c0_i32_8] : memref<512x128xi32, #tpu.memory_space<any>> -> memref<512x128xi32, #tpu.memory_space<any>>
    %6 = tpu.memref_slice %arg2[%c0_i32_4] : memref<1x!tpu.dma_semaphore, #tpu.memory_space<semaphore_mem>> -> memref<1x!tpu.dma_semaphore, #tpu.memory_space<semaphore_mem>>
    %7 = tpu.memref_squeeze %6 : memref<1x!tpu.dma_semaphore, #tpu.memory_space<semaphore_mem>> -> memref<!tpu.dma_semaphore, #tpu.memory_space<semaphore_mem>>
    tpu.wait_dma2 semaphore(%7 : memref<!tpu.dma_semaphore, #tpu.memory_space<semaphore_mem>>) src(%4 : memref<512x128xi32, #tpu.memory_space<any>>) dst(%5 : memref<512x128xi32, #tpu.memory_space<any>>)
    return
  }
}

</mosaic_0001>

<bundles_post_ra>
// kernel: tpu_custom_call.1
= control target key start
LH: loop header
LB: loop body
LE: loop exit
PB: predicated region body
PF: predicated region fallthrough
CT: control target
= control target key end

     0   :  { %s44_s6 = smov 256   ;;  %s45_s7 = smov 128   ;;  %s66_s0 = inlined_call_operand.hbm [shape: s32[512,256], index: 0, kind: input, shape index: {}]   ;;  %s67_s1 = inlined_call_operand.hbm [shape: s32[512,128], index: 1, kind: output, shape index: {}]  }
   0x1   :  { %18 = sst [smem:[#allocation4]] %s44_s6  ;;  %s46_s8 = smov 8  }
   0x2   :  { %20 = sst [smem:[#allocation4 + $0x1]] %s45_s7  ;;  %s47_s9 = smov [#allocation2]  }
   0x3   :  { %22 = sst [smem:[#allocation4 + $0x2]] %s46_s8  ;;  %s48_s10 = smov [#allocation3]  }
   0x4   :  { %s49_s11 = smov 0  }
   0x5   :  { %24 = dma.general %s66_s0, 8192, %s67_s1, %s47_s9, %s48_s10, [#allocation4], %s49_s11, 0  }
   0x6   :  { %42 = dma.done.wait [#allocation2], 8192 }
   0x7   :  { %43 = vsyncadd [#allocation2], 4294959104 }
   0x8   :  { %29 = vsyncmov [#allocation2] }
   0xb   :  { %s30_s16 = vpop.sfrf %29 }
   0xc   :  { %p35_p0 = scmp.ne.s32.totalorder %s30_s16, 0 }
   0xe   :  { %34 = shalt.err (%p35_p0)  }

</bundles_post_ra>
